<compile_context>
chip_gen: v5e
topology: v5e:2x2
jax: 0.10.0
libtpu: 0.0.40
codegen_flags: <defaults>
</compile_context>

<pallas_src>
import functools

import jax
import jax.numpy as jnp
from jax.experimental import pallas as pl
from jax.experimental.pallas import tpu as pltpu

KH = KW = 3
C_OUT = 32


def conv_relu_kernel(x_ref, w_ref, b_ref, o_ref, *, H, W, BN):
    # x_ref: (BN, 1, HW + 2*(W+1))  flat input planes with a 1-D zero halo
    # w_ref: (9, C_OUT, 1)          per-tap weight columns (t = kh*3 + kw)
    # b_ref: (C_OUT, 1)             bias column
    # o_ref: (BN, C_OUT, HW)        NCHW-flattened output block (lane-dense)
    HW = H * W
    PAD = W + 1

    bias = b_ref[...]                                            # (C_OUT, 1)

    # Column-validity masks (shared across the batch block; hoisted out of loops).
    col = jax.lax.broadcasted_iota(jnp.int32, (1, HW), 1) % W
    not_left = col >= 1            # valid when the tap reads column j-1
    not_right = col <= W - 2       # valid when the tap reads column j+1

    for b in range(BN):
        xe = x_ref[b]                                            # (1, HW + 2*PAD)
        acc = jnp.zeros((C_OUT, HW), jnp.float32)
        t = 0
        for dy in (-1, 0, 1):
            for dx in (-1, 0, 1):
                s = dy * W + dx
                sh = xe[:, PAD + s: PAD + s + HW]                # (1, HW) static slice
                if dx == -1:
                    sh = jnp.where(not_left, sh, 0.0)
                elif dx == 1:
                    sh = jnp.where(not_right, sh, 0.0)
                acc = acc + w_ref[t] * sh                        # (C_OUT,1)*(1,HW) -> (C_OUT,HW)
                t += 1
        o_ref[b] = jnp.maximum(acc + bias, 0.0)                  # fused bias + ReLU


def _pick_batch_block(n, hw):
    """Images per grid step: amortize per-step overhead, keep >= 2 grid steps
    (both v7x TensorCores busy) and stay far below the VMEM limit."""
    per_image_bytes = 2 * 4 * (C_OUT + 2) * hw           # double-buffered in+out, f32
    cap = max(1, (8 * 1024 * 1024) // per_image_bytes)   # ~8 MiB of blocks per step
    cap = min(cap, 8, n)
    best = 1
    for bn in range(1, cap + 1):
        if n % bn == 0 and (n // bn >= 2 or n == 1):
            best = bn
    return best


def conv2d_relu(x_nchw, weight, bias):
    """x_nchw: (N, 1, H, W) f32; weight: (32, 1, 3, 3); bias: (32,). Returns (N, 32, H, W)."""
    N, C_in, H, W = x_nchw.shape
    assert C_in == 1
    HW = H * W
    PAD = W + 1
    BN = _pick_batch_block(N, HW)

    # Flat plane + tiny lane-dense 1-D halo (replaces the 2-D (H+2, W+2) HBM pad).
    x_flat = x_nchw.reshape(N, 1, HW)
    x_halo = jnp.pad(x_flat, ((0, 0), (0, 0), (PAD, PAD)))       # (N, 1, HW + 2*PAD)

    # Weights pre-shaped so no in-kernel transpose/relayout is needed:
    # w_taps[t, c, 0] = weight[c, 0, kh, kw] with t = kh*3 + kw.
    w_taps = jnp.transpose(weight[:, 0, :, :].reshape(C_OUT, KH * KW),
                           (1, 0))[:, :, None]                   # (9, 32, 1)
    b_col = bias.reshape(C_OUT, 1)

    kernel = functools.partial(conv_relu_kernel, H=H, W=W, BN=BN)

    out = pl.pallas_call(
        kernel,
        out_shape=jax.ShapeDtypeStruct((N, C_OUT, HW), jnp.float32),
        grid_spec=pltpu.PrefetchScalarGridSpec(
            num_scalar_prefetch=0,
            grid=(N // BN,),
            in_specs=[
                pl.BlockSpec((BN, 1, HW + 2 * PAD), lambda n: (n, 0, 0)),
                pl.BlockSpec((KH * KW, C_OUT, 1), lambda n: (0, 0, 0)),
                pl.BlockSpec((C_OUT, 1), lambda n: (0, 0)),
            ],
            out_specs=pl.BlockSpec((BN, C_OUT, HW), lambda n: (n, 0, 0)),
        ),
        compiler_params=pltpu.CompilerParams(
            dimension_semantics=("parallel",)),
    )(x_halo, w_taps, b_col)

    # Output is already NCHW-flattened: only a free reshape, no transpose.
    return out.reshape(N, C_OUT, H, W)


if __name__ == "__main__":
    key = jax.random.PRNGKey(0)
    k_x, k_w, k_b = jax.random.split(key, 3)

    # Small shapes consistent with the module's forward (C_in must be 1).
    N, C_in, H, W = 2, 1, 16, 16
    x = jax.random.normal(k_x, (N, C_in, H, W), dtype=jnp.float32)

    # Deterministic parameter init (Conv2d(1, 32, 3) shapes).
    fan_in = C_in * KH * KW
    bound = 1.0 / (fan_in ** 0.5)
    weight = jax.random.uniform(k_w, (C_OUT, C_in, KH, KW),
                                minval=-bound, maxval=bound, dtype=jnp.float32)
    bias = jax.random.uniform(k_b, (C_OUT,),
                              minval=-bound, maxval=bound, dtype=jnp.float32)

    y = conv2d_relu(x, weight, bias)
    jax.block_until_ready(y)

    # Reference check with XLA conv (stride 1, padding 1, + bias + ReLU).
    ref = jax.lax.conv_general_dilated(
        x, weight, window_strides=(1, 1), padding=((1, 1), (1, 1)),
        dimension_numbers=("NCHW", "OIHW", "NCHW"))
    ref = jnp.maximum(ref + bias.reshape(1, C_OUT, 1, 1), 0.0)
    assert y.shape == (N, C_OUT, H, W)
    assert jnp.max(jnp.abs(y - ref)) < 1e-4

    print("KERNEL_OK")
</pallas_src>

<mosaic_0001>
module attributes {stable_mosaic.version = 11 : i64} {
  func.func @conv_relu_kernel(%arg0: i32, %arg1: memref<1x1x290xf32, #tpu.memory_space<vmem>>, %arg2: memref<9x32x1xf32, #tpu.memory_space<vmem>>, %arg3: memref<32x1xf32, #tpu.memory_space<vmem>>, %arg4: memref<1x32x256xf32, #tpu.memory_space<vmem>>) attributes {dimension_semantics = [#tpu.dimension_semantics<parallel>], iteration_bounds = array<i64: 2>, scalar_prefetch = 0 : i64, scratch_operands = 0 : i64, tpu.core_type = #tpu.core_type<tc>, window_params = [{transform_indices = @transform_0, window_bounds = array<i64: 1, 1, 290>}, {pipeline_mode = #tpu.pipeline_mode<synchronous>, transform_indices = @transform_1, window_bounds = array<i64: 9, 32, 1>}, {pipeline_mode = #tpu.pipeline_mode<synchronous>, transform_indices = @transform_2, window_bounds = array<i64: 32, 1>}, {transform_indices = @transform_3, window_bounds = array<i64: 1, 32, 256>}]} {
    %c0 = arith.constant 0 : index
    %c0_0 = arith.constant 0 : index
    %0 = vector.load %arg3[%c0, %c0_0] : memref<32x1xf32, #tpu.memory_space<vmem>>, vector<32x1xf32>
    %1 = tpu.iota {dimensions = array<i32: 1>} : vector<1x256xi32>
    %c16_i32 = arith.constant 16 : i32
    %c0_i32 = arith.constant 0 : i32
    %2 = arith.cmpi eq, %c16_i32, %c0_i32 : i32
    %c1_i32 = arith.constant 1 : i32
    %3 = arith.select %2, %c1_i32, %c16_i32 : i32
    %4 = vector.broadcast %3 : i32 to vector<1x256xi32>
    %5 = arith.remsi %1, %4 : vector<1x256xi32>
    %c0_i32_1 = arith.constant 0 : i32
    %6 = vector.broadcast %c0_i32_1 : i32 to vector<1x256xi32>
    %7 = arith.cmpi ne, %5, %6 : vector<1x256xi32>
    %c0_i32_2 = arith.constant 0 : i32
    %8 = vector.broadcast %c0_i32_2 : i32 to vector<1x256xi32>
    %9 = arith.cmpi slt, %5, %8 : vector<1x256xi32>
    %c0_i32_3 = arith.constant 0 : i32
    %10 = arith.cmpi slt, %3, %c0_i32_3 : i32
    %11 = vector.broadcast %10 : i1 to vector<1x256xi1>
    %12 = vector.broadcast %11 : vector<1x256xi1> to vector<1x256xi1>
    %13 = arith.xori %9, %12 : vector<1x256xi1>
    %14 = arith.andi %13, %7 : vector<1x256xi1>
    %15 = vector.broadcast %3 : i32 to vector<1x256xi32>
    %16 = arith.addi %5, %15 : vector<1x256xi32>
    %17 = arith.select %14, %16, %5 : vector<1x256xi1>, vector<1x256xi32>
    %c1_i32_4 = arith.constant 1 : i32
    %18 = vector.broadcast %c1_i32_4 : i32 to vector<1x256xi32>
    %19 = arith.cmpi sge, %17, %18 : vector<1x256xi32>
    %c14_i32 = arith.constant 14 : i32
    %20 = vector.broadcast %c14_i32 : i32 to vector<1x256xi32>
    %21 = arith.cmpi sle, %17, %20 : vector<1x256xi32>
    %c0_5 = arith.constant 0 : index
    %c0_6 = arith.constant 0 : index
    %c0_7 = arith.constant 0 : index
    %22 = vector.load %arg1[%c0_5, %c0_6, %c0_7] : memref<1x1x290xf32, #tpu.memory_space<vmem>>, vector<1x1x290xf32>
    %23 = vector.shape_cast %22 : vector<1x1x290xf32> to vector<1x290xf32>
    %cst = arith.constant 0.000000e+00 : f32
    %24 = vector.broadcast %cst : f32 to vector<32x256xf32>
    %25 = vector.extract_strided_slice %23 {offsets = [0, 0], sizes = [1, 256], strides = [1, 1]} : vector<1x290xf32> to vector<1x256xf32>
    %cst_8 = arith.constant 0.000000e+00 : f32
    %26 = vector.broadcast %cst_8 : f32 to vector<1x256xf32>
    %27 = arith.select %19, %25, %26 : vector<1x256xi1>, vector<1x256xf32>
    %c0_9 = arith.constant 0 : index
    %c0_10 = arith.constant 0 : index
    %c0_11 = arith.constant 0 : index
    %28 = vector.load %arg2[%c0_9, %c0_10, %c0_11] : memref<9x32x1xf32, #tpu.memory_space<vmem>>, vector<1x32x1xf32>
    %29 = vector.shape_cast %28 : vector<1x32x1xf32> to vector<32x1xf32>
    %30 = vector.broadcast %29 : vector<32x1xf32> to vector<32x256xf32>
    %31 = vector.broadcast %27 : vector<1x256xf32> to vector<32x256xf32>
    %32 = arith.mulf %30, %31 : vector<32x256xf32>
    %33 = arith.addf %24, %32 : vector<32x256xf32>
    %34 = vector.extract_strided_slice %23 {offsets = [0, 1], sizes = [1, 256], strides = [1, 1]} : vector<1x290xf32> to vector<1x256xf32>
    %c1 = arith.constant 1 : index
    %c0_12 = arith.constant 0 : index
    %c0_13 = arith.constant 0 : index
    %35 = vector.load %arg2[%c1, %c0_12, %c0_13] : memref<9x32x1xf32, #tpu.memory_space<vmem>>, vector<1x32x1xf32>
    %36 = vector.shape_cast %35 : vector<1x32x1xf32> to vector<32x1xf32>
    %37 = vector.broadcast %36 : vector<32x1xf32> to vector<32x256xf32>
    %38 = vector.broadcast %34 : vector<1x256xf32> to vector<32x256xf32>
    %39 = arith.mulf %37, %38 : vector<32x256xf32>
    %40 = arith.addf %33, %39 : vector<32x256xf32>
    %41 = vector.extract_strided_slice %23 {offsets = [0, 2], sizes = [1, 256], strides = [1, 1]} : vector<1x290xf32> to vector<1x256xf32>
    %cst_14 = arith.constant 0.000000e+00 : f32
    %42 = vector.broadcast %cst_14 : f32 to vector<1x256xf32>
    %43 = arith.select %21, %41, %42 : vector<1x256xi1>, vector<1x256xf32>
    %c2 = arith.constant 2 : index
    %c0_15 = arith.constant 0 : index
    %c0_16 = arith.constant 0 : index
    %44 = vector.load %arg2[%c2, %c0_15, %c0_16] : memref<9x32x1xf32, #tpu.memory_space<vmem>>, vector<1x32x1xf32>
    %45 = vector.shape_cast %44 : vector<1x32x1xf32> to vector<32x1xf32>
    %46 = vector.broadcast %45 : vector<32x1xf32> to vector<32x256xf32>
    %47 = vector.broadcast %43 : vector<1x256xf32> to vector<32x256xf32>
    %48 = arith.mulf %46, %47 : vector<32x256xf32>
    %49 = arith.addf %40, %48 : vector<32x256xf32>
    %50 = vector.extract_strided_slice %23 {offsets = [0, 16], sizes = [1, 256], strides = [1, 1]} : vector<1x290xf32> to vector<1x256xf32>
    %cst_17 = arith.constant 0.000000e+00 : f32
    %51 = vector.broadcast %cst_17 : f32 to vector<1x256xf32>
    %52 = arith.select %19, %50, %51 : vector<1x256xi1>, vector<1x256xf32>
    %c3 = arith.constant 3 : index
    %c0_18 = arith.constant 0 : index
    %c0_19 = arith.constant 0 : index
    %53 = vector.load %arg2[%c3, %c0_18, %c0_19] : memref<9x32x1xf32, #tpu.memory_space<vmem>>, vector<1x32x1xf32>
    %54 = vector.shape_cast %53 : vector<1x32x1xf32> to vector<32x1xf32>
    %55 = vector.broadcast %54 : vector<32x1xf32> to vector<32x256xf32>
    %56 = vector.broadcast %52 : vector<1x256xf32> to vector<32x256xf32>
    %57 = arith.mulf %55, %56 : vector<32x256xf32>
    %58 = arith.addf %49, %57 : vector<32x256xf32>
    %59 = vector.extract_strided_slice %23 {offsets = [0, 17], sizes = [1, 256], strides = [1, 1]} : vector<1x290xf32> to vector<1x256xf32>
    %c4 = arith.constant 4 : index
    %c0_20 = arith.constant 0 : index
    %c0_21 = arith.constant 0 : index
    %60 = vector.load %arg2[%c4, %c0_20, %c0_21] : memref<9x32x1xf32, #tpu.memory_space<vmem>>, vector<1x32x1xf32>
    %61 = vector.shape_cast %60 : vector<1x32x1xf32> to vector<32x1xf32>
    %62 = vector.broadcast %61 : vector<32x1xf32> to vector<32x256xf32>
    %63 = vector.broadcast %59 : vector<1x256xf32> to vector<32x256xf32>
    %64 = arith.mulf %62, %63 : vector<32x256xf32>
    %65 = arith.addf %58, %64 : vector<32x256xf32>
    %66 = vector.extract_strided_slice %23 {offsets = [0, 18], sizes = [1, 256], strides = [1, 1]} : vector<1x290xf32> to vector<1x256xf32>
    %cst_22 = arith.constant 0.000000e+00 : f32
    %67 = vector.broadcast %cst_22 : f32 to vector<1x256xf32>
    %68 = arith.select %21, %66, %67 : vector<1x256xi1>, vector<1x256xf32>
    %c5 = arith.constant 5 : index
    %c0_23 = arith.constant 0 : index
    %c0_24 = arith.constant 0 : index
    %69 = vector.load %arg2[%c5, %c0_23, %c0_24] : memref<9x32x1xf32, #tpu.memory_space<vmem>>, vector<1x32x1xf32>
    %70 = vector.shape_cast %69 : vector<1x32x1xf32> to vector<32x1xf32>
    %71 = vector.broadcast %70 : vector<32x1xf32> to vector<32x256xf32>
    %72 = vector.broadcast %68 : vector<1x256xf32> to vector<32x256xf32>
    %73 = arith.mulf %71, %72 : vector<32x256xf32>
    %74 = arith.addf %65, %73 : vector<32x256xf32>
    %75 = vector.extract_strided_slice %23 {offsets = [0, 32], sizes = [1, 256], strides = [1, 1]} : vector<1x290xf32> to vector<1x256xf32>
    %cst_25 = arith.constant 0.000000e+00 : f32
    %76 = vector.broadcast %cst_25 : f32 to vector<1x256xf32>
    %77 = arith.select %19, %75, %76 : vector<1x256xi1>, vector<1x256xf32>
    %c6 = arith.constant 6 : index
    %c0_26 = arith.constant 0 : index
    %c0_27 = arith.constant 0 : index
    %78 = vector.load %arg2[%c6, %c0_26, %c0_27] : memref<9x32x1xf32, #tpu.memory_space<vmem>>, vector<1x32x1xf32>
    %79 = vector.shape_cast %78 : vector<1x32x1xf32> to vector<32x1xf32>
    %80 = vector.broadcast %79 : vector<32x1xf32> to vector<32x256xf32>
    %81 = vector.broadcast %77 : vector<1x256xf32> to vector<32x256xf32>
    %82 = arith.mulf %80, %81 : vector<32x256xf32>
    %83 = arith.addf %74, %82 : vector<32x256xf32>
    %84 = vector.extract_strided_slice %23 {offsets = [0, 33], sizes = [1, 256], strides = [1, 1]} : vector<1x290xf32> to vector<1x256xf32>
    %c7 = arith.constant 7 : index
    %c0_28 = arith.constant 0 : index
    %c0_29 = arith.constant 0 : index
    %85 = vector.load %arg2[%c7, %c0_28, %c0_29] : memref<9x32x1xf32, #tpu.memory_space<vmem>>, vector<1x32x1xf32>
    %86 = vector.shape_cast %85 : vector<1x32x1xf32> to vector<32x1xf32>
    %87 = vector.broadcast %86 : vector<32x1xf32> to vector<32x256xf32>
    %88 = vector.broadcast %84 : vector<1x256xf32> to vector<32x256xf32>
    %89 = arith.mulf %87, %88 : vector<32x256xf32>
    %90 = arith.addf %83, %89 : vector<32x256xf32>
    %91 = vector.extract_strided_slice %23 {offsets = [0, 34], sizes = [1, 256], strides = [1, 1]} : vector<1x290xf32> to vector<1x256xf32>
    %cst_30 = arith.constant 0.000000e+00 : f32
    %92 = vector.broadcast %cst_30 : f32 to vector<1x256xf32>
    %93 = arith.select %21, %91, %92 : vector<1x256xi1>, vector<1x256xf32>
    %c8 = arith.constant 8 : index
    %c0_31 = arith.constant 0 : index
    %c0_32 = arith.constant 0 : index
    %94 = vector.load %arg2[%c8, %c0_31, %c0_32] : memref<9x32x1xf32, #tpu.memory_space<vmem>>, vector<1x32x1xf32>
    %95 = vector.shape_cast %94 : vector<1x32x1xf32> to vector<32x1xf32>
    %96 = vector.broadcast %95 : vector<32x1xf32> to vector<32x256xf32>
    %97 = vector.broadcast %93 : vector<1x256xf32> to vector<32x256xf32>
    %98 = arith.mulf %96, %97 : vector<32x256xf32>
    %99 = arith.addf %90, %98 : vector<32x256xf32>
    %100 = vector.broadcast %0 : vector<32x1xf32> to vector<32x256xf32>
    %101 = arith.addf %99, %100 : vector<32x256xf32>
    %cst_33 = arith.constant 0.000000e+00 : f32
    %102 = vector.broadcast %cst_33 : f32 to vector<32x256xf32>
    %103 = arith.maximumf %101, %102 : vector<32x256xf32>
    %c0_34 = arith.constant 0 : index
    %c0_35 = arith.constant 0 : index
    %c0_36 = arith.constant 0 : index
    %104 = vector.load %arg4[%c0_34, %c0_35, %c0_36] : memref<1x32x256xf32, #tpu.memory_space<vmem>>, vector<1x32x256xf32>
    %105 = vector.shape_cast %104 : vector<1x32x256xf32> to vector<32x256xf32>
    %106 = vector.shape_cast %103 : vector<32x256xf32> to vector<1x32x256xf32>
    tpu.vector_store %arg4[%c0_34, %c0_35, %c0_36], %106 {strides = array<i32>} : memref<1x32x256xf32, #tpu.memory_space<vmem>>, vector<1x32x256xf32>,
    return
  }
  func.func @transform_0(%arg0: i32) -> (i32, i32, i32) {
    %c0_i32 = arith.constant 0 : i32
    %c0_i32_0 = arith.constant 0 : i32
    %c0_i32_1 = arith.constant 0 : i32
    return %arg0, %c0_i32, %c0_i32_0 : i32, i32, i32
  }
  func.func @transform_1(%arg0: i32) -> (i32, i32, i32) {
    %c0_i32 = arith.constant 0 : i32
    %c0_i32_0 = arith.constant 0 : i32
    %c0_i32_1 = arith.constant 0 : i32
    %c0_i32_2 = arith.constant 0 : i32
    return %c0_i32, %c0_i32_0, %c0_i32_1 : i32, i32, i32
  }
  func.func @transform_2(%arg0: i32) -> (i32, i32) {
    %c0_i32 = arith.constant 0 : i32
    %c0_i32_0 = arith.constant 0 : i32
    %c0_i32_1 = arith.constant 0 : i32
    return %c0_i32, %c0_i32_0 : i32, i32
  }
  func.func @transform_3(%arg0: i32) -> (i32, i32, i32) {
    %c0_i32 = arith.constant 0 : i32
    %c0_i32_0 = arith.constant 0 : i32
    %c0_i32_1 = arith.constant 0 : i32
    return %arg0, %c0_i32, %c0_i32_0 : i32, i32, i32
  }
}

</mosaic_0001>

<bundles_post_ra>
// kernel: tpu_custom_call.1
= control target key start
LH: loop header
LB: loop body
LE: loop exit
PB: predicated region body
PF: predicated region fallthrough
CT: control target
= control target key end

     0   :  { %8 = vsyncpa [#allocation3], 0  ;;  %s1602_s0 = inlined_call_operand.vmem [shape: f32[2,1,290], index: 0, kind: input, shape index: {}]   ;;  %s1603_s1 = inlined_call_operand.vmem [shape: f32[9,32,1], index: 1, kind: input, shape index: {}]   ;;  %s1604_s2 = inlined_call_operand.vmem [shape: f32[32,1], index: 2, kind: input, shape index: {}]   ;;  %s1605_s3 = inlined_call_operand.hbm [shape: f32[2,32,256], index: 3, kind: output, shape index: {}]  }
   0x1   :  { %10 = vsyncpa [#allocation3 + $0x1], 0  ;;  %s1141_s12 = smov 0   ;;  %s1143_s13 = smov 0  }
   0x2   :  { %s1145_s14 = smov 0   ;;  %s1147_s15 = smov 0  }
   0x3 LB: > { %s1162_s16 = sadd.s32 4294967295, %s1108_s15   ;;  %s949_s17 = sadd.s32 4294967294, %s1108_s15   ;;  %s1108_s15 = sphi %s1147_s15, %s1619_s15   ;;  %s1104_s14 = sphi %s1145_s14, %s1618_s14   ;;  %s1100_s13 = sphi %s1143_s13, %s1617_s13   ;;  %s1096_s12 = sphi %s1141_s12, %s1616_s12  }
   0x4   : > { %s1166_s18 = sadd.s32 1, %s1108_s15   ;;  %s91_s19 = sadd.s32 1, %s1104_s14 }
   0x5   : > { %s88_s20 = ssub.s32 %s1108_s15, %s1166_s18  ;;  %p101_p0 = scmp.ne.s32.totalorder %s1104_s14, %s1100_s13 }
   0x6   : > { %p89_p1 = scmp.eq.s32.totalorder %s88_s20, 0  ;;  %p102_p2 = scmp.eq.s32.totalorder %s1162_s16, 1 }
   0x7   : > { %p107_p3 = scmp.ne.s32.totalorder %s1100_s13, %s1096_s12  ;;  %p108_p4 = scmp.eq.s32.totalorder %s949_s17, 1 }
   0x8   : > { %s1177_s21 = scalar_select %p89_p1, %s1104_s14, %s91_s19  }
   0x9   : > { %p1179_p5 = por %p102_p2, %p101_p0  ;;  %p1183_p6 = por %p108_p4, %p107_p3 }
   0xa   : > { %p952_p7 = scmp.ge.s32.totalorder %s1108_s15, 1  ;;  %p139_p8 = scmp.lt.s32.totalorder %s1108_s15, 3 }
   0xc   : > { %p140_p9 = pnand %p952_p7, %p139_p8 }
   0xd   : > { %p162_p10 = scmp.lt.s32.totalorder (!%p140_p9), %s1162_s16, 1  ;;  %s1111_s27 = smov (!%p140_p9), 126  }
   0xe   : > { %143 = sbr.rel (%p140_p9) target bundleno = 556 (0x22c), region = 32  ;;  %s1112_s9 = smov (!%p140_p9), 112  }
   0xf   : > { %s1113_s8 = smov (!%p140_p9), 127   ;;  %s1115_s10 = smov (!%p140_p9), 110  }
  0x10   : > { %s1116_s28 = smov (!%p140_p9), 96  }
  0x13   : > { %v954_v0 = vld [vmem:[%s1603_s1 + $0x20] sm:$0xff]  ;;  %v211_v1 = vld [vmem:[%s1603_s1 + $0x10] sm:$0xff]  ;;  %v1110_v3 = vmov 0   ;;  %s163_s30 = scalar_select %p162_p10, %s1162_s16, 1  ;;  %v955_v4 = vld [vmem:[%s1603_s1 + $0x28] sm:$0xff]  ;;  %v170_v38 = vlaneseq  ;;  %vm357_vm0 = vcmask 1031168  }
  0x14   : > { %v209_v2 = vld [vmem:[%s1603_s1] sm:$0xff]  ;;  %1045 = vset.pattern.permute.xlu2 %v1110_v3  ;;  %1044 = vset.pattern.permute.xlu1 %v1110_v3  ;;  %v212_v5 = vld [vmem:[%s1603_s1 + $0x18] sm:$0xff]  ;;  %v210_v6 = vld [vmem:[%s1603_s1 + $0x8] sm:$0xff]  ;;  %vm413_vm3 = vcmask 916480   ;;  %vm326_vm6 = vcmask 1039360   ;;  %vm536_vm7 = vcmask 908288  }
  0x15   : > { %1043 = vset.pattern.permute.xlu0 %v1110_v3  ;;  %258 = vperm.xlu2 %1045, %v954_v0   ;;  %s992_s4 = smul.u32 3, %s163_s30  ;;  %v957_v9 = vld [vmem:[%s1603_s1 + $0x38] sm:$0xff]  ;;  %v956_v10 = vld [vmem:[%s1603_s1 + $0x30] sm:$0xff]  ;;  %v958_v13 = vld [vmem:[%s1603_s1 + $0x40] sm:$0xff]  ;;  %v171_v39 = vand.u32 127, %v170_v38  ;;  %vm567_vm8 = vcmask 900096  }
  0x16   : > { %225 = vperm.xlu1 %1044, %v211_v1   ;;  %215 = vperm.xlu0 %1043, %v209_v2   ;;  %v961_v14 = vld [vmem:[%s1603_s1 + $0x58] sm:$0xff]  ;;  %v960_v15 = vld [vmem:[%s1603_s1 + $0x50] sm:$0xff]  ;;  %v959_v16 = vld [vmem:[%s1603_s1 + $0x48] sm:$0xff]  ;;  %vm623_vm9 = vcmask 785408   ;;  %vm777_vm10 = vcmask 769024   ;;  %vm746_vm11 = vcmask 777216  }
  0x17   : > { %s165_s19 = scalar_lea.vmem %s1602_s0, %s992_s4  ;;  %v964_v17 = vld [vmem:[%s1603_s1 + $0x70] sm:$0xff]  ;;  %v963_v18 = vld [vmem:[%s1603_s1 + $0x68] sm:$0xff]  ;;  %v962_v19 = vld [vmem:[%s1603_s1 + $0x60] sm:$0xff]  ;;  %v172_v43 = vadd.s32 128, %v171_v39  ;;  %v177_v47 = vand.u32 15, %v171_v39  ;;  %s991_s30 = sshll.u32 %s1162_s16, 6 }
  0x18   : > { %v201_v7 = vld [vmem:[%s165_s19] sm:$0x7]  ;;  %v967_v20 = vld [vmem:[%s1603_s1 + $0x88] sm:$0xff]  ;;  %v965_v22 = vld [vmem:[%s1603_s1 + $0x78] sm:$0xff]  ;;  %s883_s6 = scalar_lea.hbm %s1605_s3, %s991_s30  ;;  %s1066_s19 = scalar_lea.hbm %s1605_s3, 128 }
  0x19   : > { %v1212_v8 = vperm.slane %v201_v7, 0  ;;  %v1221_v11 = vperm.slane %v201_v7, 2  ;;  %v1223_v12 = vperm.slane %v201_v7, 1  ;;  %v966_v21 = vld [vmem:[%s1603_s1 + $0x80] sm:$0xff]  ;;  %v969_v23 = vld [vmem:[%s1603_s1 + $0x98] sm:$0xff]  ;;  %v968_v24 = vld [vmem:[%s1603_s1 + $0x90] sm:$0xff] }
  0x1a   : > { %v184_v48 = vand.u32 15, %v172_v43  ;;  %vm1292_vm1 = vcmp.le.s32.totalorder %v177_v47, 14  ;;  %vm1326_vm4 = vcmp.ge.s32.totalorder %v177_v47, 1  ;;  %s886_s7 = sshll.u32 %s883_s6, 4  ;;  %s887_s7 = int_to_ptr.hbm [resolvable:$true] %s886_s7 }
  0x1c   : > { %vm1296_vm2 = vcmp.le.s32.totalorder %v184_v48, 14  ;;  %vm1330_vm5 = vcmp.ge.s32.totalorder %v184_v48, 1 }
  0x1d   : > { %263 = vperm.xlu2 %1045, %v955_v4  }
  0x1e   : > { %230 = vperm.xlu1 %1044, %v212_v5   ;;  %220 = vperm.xlu0 %1043, %v210_v6  }
  0x25   : > { %351 = vrot.lane.b32.xlu2 %v1212_v8, %s1111_s27 }
  0x26   : > { %273 = vperm.xlu1 %1044, %v957_v9   ;;  %268 = vperm.xlu0 %1043, %v956_v10  }
  0x2d   : > { %371 = vperm.xlu2 %1045, %v958_v13  }
  0x2e   : > { %355 = vrot.lane.b32.xlu1 %v1221_v11, %s1111_s27  ;;  %353 = vrot.lane.b32.xlu0 %v1223_v12, %s1111_s27  ;;  %s1117_s27 = smov 95  }
  0x35   : > { %386 = vperm.xlu2 %1045, %v961_v14  }
  0x36   : > { %381 = vperm.xlu1 %1044, %v960_v15   ;;  %376 = vperm.xlu0 %1043, %v959_v16  }
  0x3d   : > { %411 = vrot.lane.b32.xlu2 %v1221_v11, %s1112_s9 }
  0x3e   : > { %409 = vrot.lane.b32.xlu1 %v1223_v12, %s1112_s9  ;;  %407 = vrot.lane.b32.xlu0 %v1212_v8, %s1112_s9  ;;  %s1114_s9 = smov 111  }
  0x45   : > { %437 = vperm.xlu2 %1045, %v964_v17  }
  0x46   : > { %432 = vperm.xlu1 %1044, %v963_v18   ;;  %427 = vperm.xlu0 %1043, %v962_v19  }
  0x4d   : > { %475 = vperm.xlu2 %1045, %v967_v20  }
  0x4e   : > { %470 = vperm.xlu1 %1044, %v966_v21   ;;  %442 = vperm.xlu0 %1043, %v965_v22  }
  0x56   : > { %485 = vperm.xlu1 %1044, %v969_v23   ;;  %480 = vperm.xlu0 %1043, %v968_v24  }
  0x6f   : > { %v259_v25 = vpop.permute.xlu2 %258 }
  0x70   : > { %v278_v26 = vmul.f32 %v259_v25, %v1212_v8  ;;  %v279_v27 = vmul.f32 %v259_v25, %v1223_v12  ;;  %v280_v28 = vmul.f32 %v1221_v11, %v259_v25 }
  0x72   : > { %306 = vrot.lane.b32.xlu1 %v280_v28, %s1113_s8  ;;  %304 = vrot.lane.b32.xlu0 %v279_v27, %s1113_s8 }
  0x73   : > { %302 = vrot.lane.b32.xlu2 %v278_v26, %s1113_s8 }
  0x77   : > { %v264_v29 = vpop.permute.xlu2 %263 }
  0x78   : > { %v281_v30 = vmul.f32 %v264_v29, %v1212_v8  ;;  %v282_v31 = vmul.f32 %v264_v29, %v1223_v12  ;;  %v283_v32 = vmul.f32 %v1221_v11, %v264_v29 }
  0x7a   : > { %312 = vrot.lane.b32.xlu1 %v283_v32, %s1113_s8  ;;  %310 = vrot.lane.b32.xlu0 %v282_v31, %s1113_s8 }
  0x7b   : > { %308 = vrot.lane.b32.xlu2 %v281_v30, %s1113_s8 }
  0x7f   : > { %v352_v35 = vpop.permute.xlu2 %351 }
  0x87   : > { %v372_v40 = vpop.permute.xlu2 %371 }
  0x88   : > { %v1278_v33 = vpop.permute.xlu1 %225  ;;  %v1280_v34 = vpop.permute.xlu0 %215 }
  0x8f   : > { %v387_v49 = vpop.permute.xlu2 %386 }
  0x90   : > { %v1282_v36 = vpop.permute.xlu1 %230  ;;  %v1284_v37 = vpop.permute.xlu0 %220 }
  0x97   : > { %v412_v10 = vpop.permute.xlu2 %411 }
  0x98   : > { %v274_v41 = vpop.permute.xlu1 %273  ;;  %v269_v42 = vpop.permute.xlu0 %268 }
  0x99   : > { %v284_v44 = vmul.f32 %v269_v42, %v1212_v8  ;;  %v285_v45 = vmul.f32 %v269_v42, %v1223_v12  ;;  %v286_v46 = vmul.f32 %v1221_v11, %v269_v42  ;;  %v287_v54 = vmul.f32 %v274_v41, %v1212_v8 }
  0x9a   : > { %v288_v57 = vmul.f32 %v274_v41, %v1223_v12  ;;  %v289_v58 = vmul.f32 %v1221_v11, %v274_v41 }
  0x9b   : > { %314 = vrot.lane.b32.xlu2 %v284_v44, %s1113_s8  ;;  %318 = vrot.lane.b32.xlu1 %v286_v46, %s1113_s8 }
  0x9c   : > { %316 = vrot.lane.b32.xlu0 %v285_v45, %s1113_s8 }
  0x9f   : > { %v438_v23 = vpop.permute.xlu2 %437 }
  0xa0   : > { %v356_v52 = vpop.permute.xlu1 %355  ;;  %v354_v53 = vpop.permute.xlu0 %353 }
  0xa1   : > { %v358_v55 = vsel %vm357_vm0, %v352_v35, %v354_v53  ;;  %v359_v56 = vsel %vm357_vm0, %v354_v53, %v356_v52 }
  0xa2   : > { %v362_v59 = vsel %vm1292_vm1, %v358_v55, 0.0  ;;  %v363_v60 = vsel %vm1296_vm2, %v359_v56, 0.0 }
  0xa3   : > { %v389_v61 = vperm.slane %v362_v59, 0  ;;  %v390_v62 = vperm.slane %v363_v60, 0  ;;  %320 = vrot.lane.b32.xlu2 %v287_v54, %s1113_s8  ;;  %324 = vrot.lane.b32.xlu1 %v289_v58, %s1113_s8  ;;  %v208_v58 = vsel %vm1330_vm5, %v1223_v12, 0.0 }
  0xa4   : > { %322 = vrot.lane.b32.xlu0 %v288_v57, %s1113_s8  ;;  %v207_v57 = vsel %vm1326_vm4, %v1212_v8, 0.0 }
  0xa5   : > { %v1310_v63 = vmul.f32 %v390_v62, %v372_v40  ;;  %v1312_v0 = vmul.f32 %v389_v61, %v372_v40  ;;  %v1314_v1 = vmul.f32 %v389_v61, %v387_v49  ;;  %v1316_v2 = vmul.f32 %v390_v62, %v387_v49 }
  0xa6   : > { %v1368_v60 = vperm.slane %v207_v57, 0 }
  0xa7   : > { %v476_v43 = vpop.permute.xlu2 %475 }
  0xa8   : > { %v382_v3 = vpop.permute.xlu1 %381  ;;  %v377_v4 = vpop.permute.xlu0 %376  ;;  %v492_v44 = vmul.f32 %v476_v43, %v1223_v12  ;;  %v493_v45 = vmul.f32 %v476_v43, %v1221_v11  ;;  %v491_v46 = vmul.f32 %v476_v43, %v1212_v8 }
  0xa9   : > { %v1318_v5 = vmul.f32 %v389_v61, %v382_v3  ;;  %v1320_v6 = vmul.f32 %v390_v62, %v382_v3  ;;  %v1322_v7 = vmul.f32 %v389_v61, %v377_v4  ;;  %v1324_v9 = vmul.f32 %v390_v62, %v377_v4 }
  0xaa   : > { %v1370_v61 = vperm.slane %v208_v58, 0  ;;  %v235_v62 = vmul.f32 %v1368_v60, %v1280_v34 }
  0xac   : > { %v236_v3 = vmul.f32 %v1370_v61, %v1280_v34  ;;  %v971_v34 = vld [vmem:[%s1603_s1 + $0xa8] sm:$0xff] }
  0xb0   : > { %v410_v13 = vpop.permute.xlu1 %409  ;;  %v408_v14 = vpop.permute.xlu0 %407 }
  0xb1   : > { %v415_v17 = vsel %vm413_vm3, %v410_v13, %v412_v10  ;;  %v414_v18 = vsel %vm413_vm3, %v408_v14, %v410_v13 }
  0xb2   : > { %v419_v19 = vsel %vm1330_vm5, %v415_v17, 0.0  ;;  %v418_v20 = vsel %vm1326_vm4, %v414_v18, 0.0 }
  0xb3   : > { %v446_v21 = vperm.slane %v419_v19, 0  ;;  %v445_v22 = vperm.slane %v418_v20, 0 }
  0xb5   : > { %v1338_v24 = vmul.f32 %v445_v22, %v438_v23  ;;  %v1340_v25 = vmul.f32 %v446_v21, %v438_v23 }
  0xb8   : > { %v433_v26 = vpop.permute.xlu1 %432  ;;  %v428_v27 = vpop.permute.xlu0 %427 }
  0xb9   : > { %v1342_v28 = vmul.f32 %v445_v22, %v433_v26  ;;  %v1344_v29 = vmul.f32 %v446_v21, %v433_v26  ;;  %v447_v30 = vmul.f32 %v445_v22, %v428_v27  ;;  %v448_v31 = vmul.f32 %v446_v21, %v428_v27 }
  0xc0   : > { %v471_v32 = vpop.permute.xlu1 %470  ;;  %v443_v35 = vpop.permute.xlu0 %442 }
  0xc1   : > { %v488_v38 = vmul.f32 %v471_v32, %v1212_v8  ;;  %v489_v39 = vmul.f32 %v471_v32, %v1223_v12  ;;  %v490_v40 = vmul.f32 %v471_v32, %v1221_v11  ;;  %v1349_v41 = vmul.f32 %v445_v22, %v443_v35  ;;  %v970_v22 = vld [vmem:[%s1603_s1 + $0xa0] sm:$0xff] }
  0xc2   : > { %v1351_v42 = vmul.f32 %v446_v21, %v443_v35  ;;  %v972_v21 = vld [vmem:[%s1603_s1 + $0xb0] sm:$0xff] }
  0xc3   : > { %516 = vrot.lane.b32.xlu1 %v490_v40, %s1114_s9  ;;  %514 = vrot.lane.b32.xlu0 %v489_v39, %s1114_s9 }
  0xc4   : > { %512 = vrot.lane.b32.xlu2 %v488_v38, %s1114_s9 }
  0xc8   : > { %v481_v47 = vpop.permute.xlu0 %480  ;;  %v486_v53 = vpop.permute.xlu1 %485 }
  0xc9   : > { %v495_v48 = vmul.f32 %v481_v47, %v1223_v12  ;;  %v496_v49 = vmul.f32 %v481_v47, %v1221_v11  ;;  %v494_v52 = vmul.f32 %v481_v47, %v1212_v8  ;;  %v498_v54 = vmul.f32 %v486_v53, %v1223_v12  ;;  %v981_v47 = vld [vmem:[%s1603_s1 + $0xf8] sm:$0xff] }
  0xca   : > { %v499_v55 = vmul.f32 %v486_v53, %v1221_v11  ;;  %v497_v56 = vmul.f32 %v486_v53, %v1212_v8  ;;  %v239_v53 = vmul.f32 %v1368_v60, %v1278_v33 }
  0xcb   : > { %522 = vrot.lane.b32.xlu1 %v493_v45, %s1114_s9  ;;  %520 = vrot.lane.b32.xlu0 %v492_v44, %s1114_s9  ;;  %v973_v44 = vld [vmem:[%s1603_s1 + $0xb8] sm:$0xff] }
  0xcc   : > { %518 = vrot.lane.b32.xlu2 %v491_v46, %s1114_s9  ;;  %v976_v46 = vld [vmem:[%s1603_s1 + $0xd0] sm:$0xff] }
  0xcd   : > { %v303_v59 = vpop.permute.xlu2 %302 }
  0xd3   : > { %528 = vrot.lane.b32.xlu1 %v496_v49, %s1114_s9  ;;  %526 = vrot.lane.b32.xlu0 %v495_v48, %s1114_s9  ;;  %v980_v48 = vld [vmem:[%s1603_s1 + $0xf0] sm:$0xff]  ;;  %v979_v49 = vld [vmem:[%s1603_s1 + $0xe8] sm:$0xff] }
  0xd4   : > { %524 = vrot.lane.b32.xlu2 %v494_v52, %s1114_s9 }
  0xd5   : > { %v309_v23 = vpop.permute.xlu2 %308 }
  0xdb   : > { %534 = vrot.lane.b32.xlu1 %v499_v55, %s1114_s9  ;;  %532 = vrot.lane.b32.xlu0 %v498_v54, %s1114_s9  ;;  %v240_v54 = vmul.f32 %v1370_v61, %v1278_v33  ;;  %v241_v33 = vmul.f32 %v1368_v60, %v1282_v36 }
  0xdc   : > { %530 = vrot.lane.b32.xlu2 %v497_v56, %s1114_s9  ;;  %s1060_s9 = sshra.s32 %s887_s7, 4  ;;  %s1061_s9 = int_to_ptr.hbm [resolvable:$true] %s1060_s9 }
  0xdd   : > { %p1067_p0 = scmp.lt.s32.totalorder %s1061_s9, %s1605_s3 }
  0xe3   : > { %565 = vrot.lane.b32.xlu1 %v1221_v11, %s1115_s10  ;;  %563 = vrot.lane.b32.xlu0 %v1223_v12, %s1115_s10 }
  0xe4   : > { %561 = vrot.lane.b32.xlu2 %v1212_v8, %s1115_s10  ;;  %v307_v4 = vpop.permute.xlu1 %306  ;;  %v305_v10 = vpop.permute.xlu0 %304  ;;  %s1062_s10 = scalar_lea.hbm %s1061_s9, 64 }
  0xe5   : > { %v328_v13 = vsel %vm326_vm6, %v305_v10, %v307_v4  ;;  %v327_v14 = vsel %vm326_vm6, %v303_v59, %v305_v10  ;;  %p1063_p11 = scmp.ne.s32.totalorder %s1061_s9, %s1062_s10  ;;  %p1068_p1 = scmp.lt.s32.totalorder %s1066_s19, %s1062_s10 }
  0xe6   : > { %v344_v17 = vadd.f32 %v328_v13, %v236_v3  ;;  %v343_v18 = vadd.f32 %v327_v14, %v235_v62 }
  0xe7   : > { %p1064_p12 = pnand %p1063_p11, %p1179_p5  ;;  %p1069_p2 = por %p1068_p1, %p1067_p0 }
  0xe8   : > { %v400_v19 = vadd.f32 %v1310_v63, %v344_v17  ;;  %v399_v20 = vadd.f32 %v1312_v0, %v343_v18  ;;  %v237_v63 = vmul.f32 %v1368_v60, %v1284_v37  ;;  %v238_v0 = vmul.f32 %v1370_v61, %v1284_v37 }
  0xe9   : > { %v242_v17 = vmul.f32 %v1370_v61, %v1282_v36  ;;  %p1065_p13 = pneg %p1064_p12 }
  0xea   : > { %v1392_v26 = vadd.f32 %v447_v30, %v399_v20  ;;  %v1394_v27 = vadd.f32 %v448_v31, %v400_v19 }
  0xeb   : > { %591 = vperm.xlu1 %1044, %v972_v21   ;;  %586 = vperm.xlu0 %1043, %v971_v34   ;;  %p1070_p3 = pnand %p1069_p2, %p1065_p13 }
  0xec   : > { %581 = vperm.xlu2 %1045, %v970_v22   ;;  %v313_v32 = vpop.permute.xlu1 %312  ;;  %v311_v35 = vpop.permute.xlu0 %310 }
  0xed   : > { %v330_v38 = vsel %vm326_vm6, %v311_v35, %v313_v32  ;;  %v329_v39 = vsel %vm326_vm6, %v309_v23, %v311_v35 }
  0xee   : > { %v346_v40 = vadd.f32 %v330_v38, %v238_v0  ;;  %v345_v30 = vadd.f32 %v329_v39, %v237_v63 }
  0xf0   : > { %v402_v31 = vadd.f32 %v1324_v9, %v346_v40  ;;  %v401_v43 = vadd.f32 %v1322_v7, %v345_v30  ;;  %v975_v7 = vld [vmem:[%s1603_s1 + $0xc8] sm:$0xff]  ;;  %v974_v9 = vld [vmem:[%s1603_s1 + $0xc0] sm:$0xff] }
  0xf2   : > { %v1408_v45 = vadd.f32 %v1344_v29, %v402_v31  ;;  %v1411_v37 = vadd.f32 %v1342_v28, %v401_v43  ;;  %v978_v28 = vld [vmem:[%s1603_s1 + $0xe0] sm:$0xff]  ;;  %v977_v29 = vld [vmem:[%s1603_s1 + $0xd8] sm:$0xff] }
  0xf3   : > { %619 = vrot.lane.b32.xlu1 %v1223_v12, %s1116_s28  ;;  %617 = vrot.lane.b32.xlu0 %v1212_v8, %s1116_s28 }
  0xf4   : > { %596 = vperm.xlu2 %1045, %v973_v44  }
  0xf5   : > { %v315_v52 = vpop.permute.xlu2 %314 }
  0xfb   : > { %642 = vperm.xlu1 %1044, %v975_v7   ;;  %637 = vperm.xlu0 %1043, %v974_v9  }
  0xfc   : > { %621 = vrot.lane.b32.xlu2 %v1221_v11, %s1116_s28  ;;  %s1118_s28 = smov 94  }
  0xfd   : > { %v321_v14 = vpop.permute.xlu2 %320 }
 0x103   : > { %680 = vperm.xlu1 %1044, %v978_v28   ;;  %652 = vperm.xlu0 %1043, %v977_v29  }
 0x104   : > { %647 = vperm.xlu2 %1045, %v976_v46  }
 0x10b   : > { %695 = vperm.xlu1 %1044, %v981_v47   ;;  %690 = vperm.xlu0 %1043, %v980_v48  }
 0x10c   : > { %685 = vperm.xlu2 %1045, %v979_v49  }
 0x10d   : > { %v319_v55 = vpop.permute.xlu1 %318 }
 0x10e   : > { %v317_v56 = vpop.permute.xlu0 %316 }
 0x10f   : > { %v331_v57 = vsel %vm326_vm6, %v315_v52, %v317_v56  ;;  %v332_v58 = vsel %vm326_vm6, %v317_v56, %v319_v55 }
 0x110   : > { %v347_v59 = vadd.f32 %v331_v57, %v239_v53  ;;  %v348_v62 = vadd.f32 %v332_v58, %v240_v54 }
 0x112   : > { %v403_v3 = vadd.f32 %v1318_v5, %v347_v59  ;;  %v404_v4 = vadd.f32 %v1320_v6, %v348_v62 }
 0x114   : > { %v460_v10 = vadd.f32 %v1340_v25, %v404_v4  ;;  %v459_v13 = vadd.f32 %v1338_v24, %v403_v3 }
 0x115   : > { %v325_v18 = vpop.permute.xlu1 %324 }
 0x116   : > { %v323_v19 = vpop.permute.xlu0 %322 }
 0x117   : > { %v333_v20 = vsel %vm326_vm6, %v321_v14, %v323_v19  ;;  %v334_v21 = vsel %vm326_vm6, %v323_v19, %v325_v18 }
 0x118   : > { %v349_v5 = vadd.f32 %v333_v20, %v241_v33  ;;  %v350_v34 = vadd.f32 %v334_v21, %v242_v17 }
 0x11a   : > { %v405_v6 = vadd.f32 %v1314_v1, %v349_v5  ;;  %v406_v25 = vadd.f32 %v1316_v2, %v350_v34 }
 0x11c   : > { %v462_v24 = vadd.f32 %v1351_v42, %v406_v25  ;;  %v461_v22 = vadd.f32 %v1349_v41, %v405_v6 }
 0x11e   : > { %v513_v60 = vpop.permute.xlu2 %512 }
 0x126   : > { %v519_v23 = vpop.permute.xlu2 %518 }
 0x12e   : > { %v525_v63 = vpop.permute.xlu2 %524 }
 0x135   : > { %v517_v36 = vpop.permute.xlu1 %516  ;;  %v515_v61 = vpop.permute.xlu0 %514 }
 0x136   : > { %v537_v0 = vsel %vm536_vm7, %v513_v60, %v515_v61  ;;  %v538_v32 = vsel %vm536_vm7, %v515_v61, %v517_v36  ;;  %v531_v35 = vpop.permute.xlu2 %530 }
 0x137   : > { %v553_v38 = vadd.f32 %v537_v0, %v1392_v26  ;;  %v554_v1 = vadd.f32 %v538_v32, %v1394_v27 }
 0x13d   : > { %v523_v2 = vpop.permute.xlu1 %522  ;;  %v521_v39 = vpop.permute.xlu0 %520 }
 0x13e   : > { %v539_v42 = vsel %vm536_vm7, %v519_v23, %v521_v39  ;;  %v540_v41 = vsel %vm536_vm7, %v521_v39, %v523_v2  ;;  %v562_v31 = vpop.permute.xlu2 %561 }
 0x13f   : > { %v555_v40 = vadd.f32 %v539_v42, %v1411_v37  ;;  %v556_v30 = vadd.f32 %v540_v41, %v1408_v45 }
 0x145   : > { %v529_v43 = vpop.permute.xlu1 %528  ;;  %v527_v44 = vpop.permute.xlu0 %526 }
 0x146   : > { %v541_v7 = vsel %vm536_vm7, %v525_v63, %v527_v44  ;;  %v542_v9 = vsel %vm536_vm7, %v527_v44, %v529_v43  ;;  %v582_v27 = vpop.permute.xlu2 %581 }
 0x147   : > { %v557_v26 = vadd.f32 %v541_v7, %v459_v13  ;;  %v558_v28 = vadd.f32 %v542_v9, %v460_v10 }
 0x14d   : > { %v535_v29 = vpop.permute.xlu1 %534  ;;  %v533_v46 = vpop.permute.xlu0 %532 }
 0x14e   : > { %v543_v47 = vsel %vm536_vm7, %v531_v35, %v533_v46  ;;  %v544_v48 = vsel %vm536_vm7, %v533_v46, %v535_v29  ;;  %v597_v45 = vpop.permute.xlu2 %596 }
 0x14f   : > { %v559_v49 = vadd.f32 %v543_v47, %v461_v22  ;;  %v560_v37 = vadd.f32 %v544_v48, %v462_v24 }
 0x155   : > { %v566_v52 = vpop.permute.xlu1 %565  ;;  %v564_v53 = vpop.permute.xlu0 %563 }
 0x156   : > { %v568_v54 = vsel %vm567_vm8, %v562_v31, %v564_v53  ;;  %v569_v55 = vsel %vm567_vm8, %v564_v53, %v566_v52  ;;  %v622_v6 = vpop.permute.xlu2 %621 }
 0x157   : > { %v572_v56 = vsel %vm1292_vm1, %v568_v54, 0.0  ;;  %v573_v57 = vsel %vm1296_vm2, %v569_v55, 0.0 }
 0x158   : > { %v599_v58 = vperm.slane %v572_v56, 0  ;;  %v600_v59 = vperm.slane %v573_v57, 0 }
 0x15a   : > { %v601_v62 = vmul.f32 %v599_v58, %v582_v27  ;;  %v602_v3 = vmul.f32 %v600_v59, %v582_v27  ;;  %v607_v4 = vmul.f32 %v599_v58, %v597_v45  ;;  %v608_v10 = vmul.f32 %v600_v59, %v597_v45 }
 0x15c   : > { %v609_v13 = vadd.f32 %v601_v62, %v553_v38  ;;  %v610_v14 = vadd.f32 %v602_v3, %v554_v1  ;;  %v615_v33 = vadd.f32 %v607_v4, %v559_v49  ;;  %v616_v17 = vadd.f32 %v608_v10, %v560_v37 }
 0x15d   : > { %v592_v18 = vpop.permute.xlu1 %591  ;;  %v587_v19 = vpop.permute.xlu0 %586 }
 0x15e   : > { %v605_v20 = vmul.f32 %v599_v58, %v592_v18  ;;  %v606_v21 = vmul.f32 %v600_v59, %v592_v18  ;;  %v603_v5 = vmul.f32 %v599_v58, %v587_v19  ;;  %v604_v34 = vmul.f32 %v600_v59, %v587_v19  ;;  %v648_v1 = vpop.permute.xlu2 %647  ;;  %v168_v18 = vld [vmem:[%s1604_s2 + $0x10] sm:$0xff] }
 0x160   : > { %v613_v25 = vadd.f32 %v605_v20, %v557_v26  ;;  %v614_v24 = vadd.f32 %v606_v21, %v558_v28  ;;  %v611_v22 = vadd.f32 %v603_v5, %v555_v40  ;;  %v612_v60 = vadd.f32 %v604_v34, %v556_v30 }
 0x165   : > { %v620_v23 = vpop.permute.xlu1 %619  ;;  %v618_v63 = vpop.permute.xlu0 %617 }
 0x166   : > { %v625_v36 = vsel %vm623_vm9, %v620_v23, %v622_v6  ;;  %v624_v61 = vsel %vm623_vm9, %v618_v63, %v620_v23  ;;  %v686_v52 = vpop.permute.xlu2 %685 }
 0x167   : > { %v629_v0 = vsel %vm1330_vm5, %v625_v36, 0.0  ;;  %v628_v32 = vsel %vm1326_vm4, %v624_v61, 0.0  ;;  %v702_v53 = vmul.f32 %v686_v52, %v1223_v12  ;;  %v703_v54 = vmul.f32 %v686_v52, %v1221_v11 }
 0x168   : > { %v656_v35 = vperm.slane %v629_v0, 0  ;;  %v655_v38 = vperm.slane %v628_v32, 0  ;;  %v701_v55 = vmul.f32 %v686_v52, %v1212_v8 }
 0x16a   : > { %v661_v2 = vmul.f32 %v655_v38, %v648_v1  ;;  %v662_v39 = vmul.f32 %v656_v35, %v648_v1 }
 0x16c   : > { %v1480_v42 = vadd.f32 %v662_v39, %v614_v24  ;;  %v1482_v41 = vadd.f32 %v661_v2, %v613_v25 }
 0x16d   : > { %v643_v40 = vpop.permute.xlu1 %642  ;;  %v638_v30 = vpop.permute.xlu0 %637 }
 0x16e   : > { %v659_v31 = vmul.f32 %v655_v38, %v643_v40  ;;  %v660_v43 = vmul.f32 %v656_v35, %v643_v40  ;;  %v657_v44 = vmul.f32 %v655_v38, %v638_v30  ;;  %v658_v7 = vmul.f32 %v656_v35, %v638_v30 }
 0x170   : > { %v1484_v16 = vadd.f32 %v659_v31, %v611_v22  ;;  %v1486_v9 = vadd.f32 %v660_v43, %v612_v60  ;;  %v1488_v15 = vadd.f32 %v657_v44, %v609_v13  ;;  %v1490_v26 = vadd.f32 %v658_v7, %v610_v14  ;;  %v984_v13 = vld [vmem:[%s1603_s1 + $0x110] sm:$0xff]  ;;  %v983_v14 = vld [vmem:[%s1603_s1 + $0x108] sm:$0xff] }
 0x175   : > { %v681_v28 = vpop.permute.xlu1 %680  ;;  %v653_v27 = vpop.permute.xlu0 %652 }
 0x176   : > { %v698_v29 = vmul.f32 %v681_v28, %v1212_v8  ;;  %v699_v46 = vmul.f32 %v681_v28, %v1223_v12  ;;  %v700_v47 = vmul.f32 %v681_v28, %v1221_v11  ;;  %v663_v48 = vmul.f32 %v655_v38, %v653_v27 }
 0x177   : > { %v664_v49 = vmul.f32 %v656_v35, %v653_v27 }
 0x178   : > { %v1495_v37 = vadd.f32 %v663_v48, %v615_v33  ;;  %726 = vrot.lane.b32.xlu1 %v700_v47, %s1117_s27  ;;  %724 = vrot.lane.b32.xlu0 %v699_v46, %s1117_s27  ;;  %v982_v33 = vld [vmem:[%s1603_s1 + $0x100] sm:$0xff] }
 0x179   : > { %v1497_v45 = vadd.f32 %v664_v49, %v616_v17  ;;  %722 = vrot.lane.b32.xlu2 %v698_v29, %s1117_s27  ;;  %v169_v17 = vld [vmem:[%s1604_s2 + $0x18] sm:$0xff] }
 0x17d   : > { %v691_v56 = vpop.permute.xlu0 %690  ;;  %v696_v62 = vpop.permute.xlu1 %695 }
 0x17e   : > { %v705_v57 = vmul.f32 %v691_v56, %v1223_v12  ;;  %v706_v58 = vmul.f32 %v691_v56, %v1221_v11  ;;  %v704_v59 = vmul.f32 %v691_v56, %v1212_v8  ;;  %v708_v3 = vmul.f32 %v696_v62, %v1223_v12 }
 0x17f   : > { %v709_v4 = vmul.f32 %v696_v62, %v1221_v11  ;;  %v707_v10 = vmul.f32 %v696_v62, %v1212_v8 }
 0x180   : > { %732 = vrot.lane.b32.xlu1 %v703_v54, %s1117_s27  ;;  %730 = vrot.lane.b32.xlu0 %v702_v53, %s1117_s27 }
 0x181   : > { %728 = vrot.lane.b32.xlu2 %v701_v55, %s1117_s27 }
 0x188   : > { %738 = vrot.lane.b32.xlu1 %v706_v58, %s1117_s27  ;;  %736 = vrot.lane.b32.xlu0 %v705_v57, %s1117_s27 }
 0x189   : > { %734 = vrot.lane.b32.xlu2 %v704_v59, %s1117_s27 }
 0x190   : > { %744 = vrot.lane.b32.xlu1 %v709_v4, %s1117_s27  ;;  %742 = vrot.lane.b32.xlu0 %v708_v3, %s1117_s27 }
 0x191   : > { %740 = vrot.lane.b32.xlu2 %v707_v10, %s1117_s27  ;;  %s159_s27 = sand.u32 1, %s1100_s13  }
 0x192   : > { %s872_s8 = scalar_lea.sflag [#allocation3], %s159_s27 }
 0x198   : > { %775 = vrot.lane.b32.xlu1 %v1221_v11, %s1118_s28  ;;  %773 = vrot.lane.b32.xlu0 %v1223_v12, %s1118_s28  ;;  %v167_v11 = vld [vmem:[%s1604_s2 + $0x8] sm:$0xff]  ;;  %v985_v12 = vld [vmem:[%s1603_s1 + $0x118] sm:$0xff] }
 0x199   : > { %771 = vrot.lane.b32.xlu2 %v1212_v8, %s1118_s28  ;;  %v166_v8 = vld [vmem:[%s1604_s2] sm:$0xff]  ;;  %s953_s28 = sshll.u32 %s159_s27, 6 }
 0x19a   : > { %s1554_s29 = scalar_lea.vmem [#allocation2], %s953_s28 }
 0x19b   : > { %s884_s16 = sshll.u32 %s1554_s29, 4  ;;  %s885_s16 = int_to_ptr.vmem [resolvable:$true] %s884_s16 }
 0x1a0   : > { %801 = vperm.xlu1 %1044, %v984_v13   ;;  %796 = vperm.xlu0 %1043, %v983_v14  }
 0x1a1   : > { %791 = vperm.xlu2 %1045, %v982_v33  }
 0x1a8   : > { %834 = vperm.xlu1 %1044, %v167_v11   ;;  %829 = vperm.xlu0 %1043, %v166_v8  }
 0x1a9   : > { %806 = vperm.xlu2 %1045, %v985_v12  }
 0x1b0   : > { %844 = vperm.xlu0 %1043, %v169_v17  }
 0x1b1   : > { %839 = vperm.xlu2 %1045, %v168_v18  }
 0x1d3   : > { %v723_v19 = vpop.permute.xlu2 %722 }
 0x1db   : > { %v729_v20 = vpop.permute.xlu2 %728 }
 0x1e3   : > { %v735_v21 = vpop.permute.xlu2 %734 }
 0x1ea   : > { %v727_v5 = vpop.permute.xlu1 %726  ;;  %v725_v34 = vpop.permute.xlu0 %724 }
 0x1eb   : > { %v741_v6 = vpop.permute.xlu2 %740  ;;  %v747_v44 = vsel %vm746_vm11, %v723_v19, %v725_v34  ;;  %v748_v7 = vsel %vm746_vm11, %v725_v34, %v727_v5 }
 0x1ec   : > { %v763_v57 = vadd.f32 %v747_v44, %v1488_v15 }
 0x1f2   : > { %v733_v25 = vpop.permute.xlu1 %732  ;;  %v731_v24 = vpop.permute.xlu0 %730 }
 0x1f3   : > { %v772_v22 = vpop.permute.xlu2 %771  ;;  %v749_v47 = vsel %vm746_vm11, %v729_v20, %v731_v24  ;;  %v750_v48 = vsel %vm746_vm11, %v731_v24, %v733_v25 }
 0x1f4   : > { %v766_v59 = vadd.f32 %v750_v48, %v1486_v9 }
 0x1fa   : > { %v739_v60 = vpop.permute.xlu1 %738  ;;  %v737_v23 = vpop.permute.xlu0 %736 }
 0x1fb   : > { %v792_v63 = vpop.permute.xlu2 %791  ;;  %v751_v40 = vsel %vm746_vm11, %v735_v21, %v737_v23  ;;  %v752_v30 = vsel %vm746_vm11, %v737_v23, %v739_v60 }
 0x1fc   : > { %v767_v50 = vadd.f32 %v751_v40, %v1482_v41  ;;  %v768_v51 = vadd.f32 %v752_v30, %v1480_v42  ;;  %v764_v41 = vadd.f32 %v748_v7, %v1490_v26  ;;  %v765_v42 = vadd.f32 %v749_v47, %v1484_v16 }
 0x202   : > { %v745_v36 = vpop.permute.xlu1 %744  ;;  %v743_v61 = vpop.permute.xlu0 %742 }
 0x203   : > { %v807_v1 = vpop.permute.xlu2 %806  ;;  %v753_v17 = vsel %vm746_vm11, %v741_v6, %v743_v61  ;;  %v754_v18 = vsel %vm746_vm11, %v743_v61, %v745_v36 }
 0x204   : > { %v769_v24 = vadd.f32 %v753_v17, %v1495_v37 }
 0x20a   : > { %v776_v0 = vpop.permute.xlu1 %775  ;;  %v774_v32 = vpop.permute.xlu0 %773 }
 0x20b   : > { %v778_v35 = vsel %vm777_vm10, %v772_v22, %v774_v32  ;;  %v779_v38 = vsel %vm777_vm10, %v774_v32, %v776_v0  ;;  %v840_v58 = vpop.permute.xlu2 %839  ;;  %v770_v22 = vadd.f32 %v754_v18, %v1497_v45 }
 0x20c   : > { %v782_v2 = vsel %vm1292_vm1, %v778_v35, 0.0  ;;  %v783_v39 = vsel %vm1296_vm2, %v779_v38, 0.0 }
 0x20d   : > { %v809_v31 = vperm.slane %v782_v2, 0  ;;  %v810_v43 = vperm.slane %v783_v39, 0 }
 0x20f   : > { %v811_v49 = vmul.f32 %v809_v31, %v792_v63  ;;  %v812_v52 = vmul.f32 %v810_v43, %v792_v63  ;;  %v817_v19 = vmul.f32 %v809_v31, %v807_v1  ;;  %v818_v34 = vmul.f32 %v810_v43, %v807_v1 }
 0x211   : > { %v819_v4 = vadd.f32 %v811_v49, %v763_v57  ;;  %v820_v10 = vadd.f32 %v812_v52, %v764_v41  ;;  %v825_v6 = vadd.f32 %v817_v19, %v769_v24  ;;  %v826_v60 = vadd.f32 %v818_v34, %v770_v22 }
 0x212   : > { %v802_v28 = vpop.permute.xlu1 %801  ;;  %v797_v27 = vpop.permute.xlu0 %796 }
 0x213   : > { %v815_v29 = vmul.f32 %v809_v31, %v802_v28  ;;  %v816_v46 = vmul.f32 %v810_v43, %v802_v28  ;;  %v813_v55 = vmul.f32 %v809_v31, %v797_v27  ;;  %v814_v56 = vmul.f32 %v810_v43, %v797_v27 }
 0x215   : > { %v823_v53 = vadd.f32 %v815_v29, %v767_v50  ;;  %v824_v54 = vadd.f32 %v816_v46, %v768_v51  ;;  %v821_v33 = vadd.f32 %v813_v55, %v765_v42  ;;  %v822_v11 = vadd.f32 %v814_v56, %v766_v59 }
 0x217   : > { %v851_v62 = vadd.f32 %v840_v58, %v823_v53  ;;  %v852_v3 = vadd.f32 %v840_v58, %v824_v54 }
 0x219   : > { %v859_v13 = vmax.f32 %v851_v62, 0.0  ;;  %v860_v14 = vmax.f32 %v852_v3, 0.0 }
 0x21a   : > { %v835_v8 = vpop.permute.xlu1 %834  ;;  %v830_v12 = vpop.permute.xlu0 %829 }
 0x21b   : > { %867 = vst [vmem:[%s1554_s29 + $0x20] sm:$0xff] %v859_v13  ;;  %v849_v15 = vadd.f32 %v835_v8, %v821_v33  ;;  %v850_v16 = vadd.f32 %v835_v8, %v822_v11  ;;  %v847_v9 = vadd.f32 %v830_v12, %v819_v4  ;;  %v848_v26 = vadd.f32 %v830_v12, %v820_v10 }
 0x21c   : > { %868 = vst [vmem:[%s1554_s29 + $0x28] sm:$0xff] %v860_v14 }
 0x21d   : > { %v857_v20 = vmax.f32 %v849_v15, 0.0  ;;  %v858_v21 = vmax.f32 %v850_v16, 0.0  ;;  %v855_v5 = vmax.f32 %v847_v9, 0.0  ;;  %v856_v25 = vmax.f32 %v848_v26, 0.0 }
 0x21f   : > { %865 = vst [vmem:[%s1554_s29 + $0x10] sm:$0xff] %v857_v20 }
 0x220   : > { %866 = vst [vmem:[%s1554_s29 + $0x18] sm:$0xff] %v858_v21 }
 0x221   : > { %863 = vst [vmem:[%s1554_s29] sm:$0xff] %v855_v5 }
 0x222   : > { %864 = vst [vmem:[%s1554_s29 + $0x8] sm:$0xff] %v856_v25  ;;  %v845_v23 = vpop.permute.xlu0 %844 }
 0x223   : > { %v853_v37 = vadd.f32 %v845_v23, %v825_v6  ;;  %v854_v63 = vadd.f32 %v845_v23, %v826_v60 }
 0x225   : > { %v861_v45 = vmax.f32 %v853_v37, 0.0  ;;  %v862_v36 = vmax.f32 %v854_v63, 0.0 }
 0x227   : > { %869 = vst [vmem:[%s1554_s29 + $0x30] sm:$0xff] %v861_v45 }
 0x228   : > { %870 = vst [vmem:[%s1554_s29 + $0x38] sm:$0xff] %v862_v36 }
 0x229   : > { %1073 = shalt.err (!%p1070_p3)
}
 0x22a   : > { %s1119_s25 = smov 256   ;;  %s1120_s26 = smov 16  }
 0x22b   : > { %993 = dma.vmem_to_hbm [thread:$0]  (%p1179_p5), %s885_s16, 1024, %s887_s7, %s872_s8, %s1119_s25, %s1119_s25, %s1120_s26  }
 0x22c PF: > { %p999_p4 = scmp.ge.s32.totalorder %s1108_s15, 2  ;;  %s901_s27 = sand.u32 1, %s1096_s12  }
 0x22d   : > { %s902_s28 = scalar_lea.sflag [#allocation3], %s901_s27 }
 0x22e   : > { %p996_p7 = pnand %p999_p4, %p1183_p6 }
 0x230   : > { %p997_p8 = pneg %p996_p7 }
 0x232   : > { %1091 = dma.done.wait (%p997_p8), %s902_s28, 1024  }
 0x233   : > { %1093 = vsyncadd (%p997_p8), %s902_s28, 4294966272  ;;  %p13_p9 = scmp.ge.s32.totalorder %s1166_s18, 4   ;;  %s1616_s12 = smov %s1100_s13 }
 0x234   : > { %s1617_s13 = smov %s1104_s14  ;;  %s1618_s14 = smov %s1177_s21 }
 0x235   : > { %s1619_s15 = smov %s1166_s18  ;;  %15 = sbr.rel (!%p13_p9) target bundleno = 3 (0x3), region = 75 }
 0x23a   :  { %908 = vsyncpa [#allocation3], 1 }
 0x23b   :  { %910 = vsyncpa [#allocation3 + $0x1], 1 }

</bundles_post_ra>
